<compile_context>
chip_gen: v7x
topology: tpu7x:2x2x1
jax: 0.10.0
libtpu: 0.0.40
codegen_flags: <defaults>
</compile_context>

<pallas_src>
import functools

import jax
import jax.numpy as jnp
from jax.experimental import pallas as pl
from jax.experimental.pallas import tpu as pltpu


# ----------------------------------------------------------------------------
# Kernel 1: per-timestep encoder + message passing + x-side gate projection.
# Grid axis over T is "parallel" (no recurrent dependence).
# ----------------------------------------------------------------------------
def _encoder_gates_kernel(
    x_ref,        # (1, N, C_in)   bf16 block for timestep t
    adj_ref,      # (N, N)         bf16 row-normalized adjacency (mean agg)
    w_enc_ref,    # (C_in, Hc)     bf16
    b_enc_ref,    # (1, Hc)        f32
    w_mp_ref,     # (num_mp*n_mlp, Hc, Hc) bf16
    b_mp_ref,     # (num_mp*n_mlp, 1, Hc)  f32
    w_ihp_ref,    # (N, 4*Hs)      bf16  == pool.T @ w_ih  (pool folded in)
    b_lstm_ref,   # (1, 4*Hs)      f32
    gx_ref,       # (1, Hc, 4*Hs)  f32 output block for timestep t
    *,
    num_mp_layers,
    n_mlp_mp,
):
    xt = x_ref[0]  # (N, C_in) bf16

    # node-feature encoder MLP (bf16 MXU inputs, f32 accumulation)
    h = jnp.dot(xt, w_enc_ref[...], preferred_element_type=jnp.float32)
    h = jnp.maximum(h + b_enc_ref[...], 0.0)  # (N, Hc) f32

    # message-passing layers: mean-aggregate neighbors (dense matmul) + MLP
    for l in range(num_mp_layers):
        agg = jnp.dot(adj_ref[...], h.astype(jnp.bfloat16),
                      preferred_element_type=jnp.float32)
        for m in range(n_mlp_mp):
            idx = l * n_mlp_mp + m
            agg = jnp.dot(agg.astype(jnp.bfloat16), w_mp_ref[idx],
                          preferred_element_type=jnp.float32)
            agg = jnp.maximum(agg + b_mp_ref[idx], 0.0)
        h = agg  # (N, Hc)

    # x-side LSTM gate projection with pool + transpose folded in:
    #   (pool @ h).T @ w_ih == h.T @ (pool.T @ w_ih)
    # Contract the node axis of h directly -- no materialized transpose.
    gx = jax.lax.dot_general(
        h.astype(jnp.bfloat16), w_ihp_ref[...],
        dimension_numbers=(((0,), (0,)), ((), ())),
        preferred_element_type=jnp.float32)          # (Hc, 4*Hs)
    gx_ref[0] = gx + b_lstm_ref[...]


# ----------------------------------------------------------------------------
# Kernel 2: the tiny sequential LSTM recurrence (grid=(1,), unrolled over T).
# State is carried in registers; outputs written once at the end.
# ----------------------------------------------------------------------------
def _lstm_recurrence_kernel(
    gx_ref,       # (T, Hc, 4*Hs)  f32 precomputed x-side gates (+ bias)
    w_hh_ref,     # (Hs, 4*Hs)     f32
    h_out_ref,    # (Hc, Hs)
    c_out_ref,    # (Hc, Hs)
    *,
    seq_len,
    hidden_size,
):
    Hs = hidden_size
    h = jnp.zeros(h_out_ref.shape, jnp.float32)
    c = jnp.zeros(c_out_ref.shape, jnp.float32)

    # Fully unrolled time loop (static trip count) -- gives the scheduler
    # visibility across timesteps; recurrence matmul kept in f32 (tiny, and
    # v5e has no bf16 VPU/EUP for the elementwise gate math anyway).
    for t in range(seq_len):
        gates = gx_ref[t] + jnp.dot(h, w_hh_ref[...],
                                    preferred_element_type=jnp.float32)
        # full-slab activations (EUP), then slice the four gates
        sig = jax.nn.sigmoid(gates)   # (Hc, 4*Hs)
        tnh = jnp.tanh(gates)         # (Hc, 4*Hs)
        i_g = sig[:, 0 * Hs:1 * Hs]
        f_g = sig[:, 1 * Hs:2 * Hs]
        g_g = tnh[:, 2 * Hs:3 * Hs]
        o_g = sig[:, 3 * Hs:4 * Hs]
        c = f_g * c + i_g * g_g
        h = o_g * jnp.tanh(c)

    h_out_ref[...] = h
    c_out_ref[...] = c


# ----------------------------------------------------------------------------
# Wrapper
# ----------------------------------------------------------------------------
def gae_lstm_encoder_forward(x, edge_index, edge_attr, pos, params, cfg):
    """Returns (h_t, c_t, hidden_edge_index, hidden_edge_attr, edge_indices,
    edge_attrs, edge_indices_f2c, position, node_attrs, clusters)."""
    T, N, C_in = x.shape
    Hc = cfg["hidden_channels"]
    Hs = cfg["hidden_size"]
    L = cfg["latent_space"]
    num_mp = cfg["num_mp_layers"]
    n_mlp = cfg["n_mlp_mp"]
    clusters = cfg["clusters"]          # (N,) int32 cluster assignment
    centroids = cfg["centroids"]        # (L, 2)
    G = 4 * Hs

    # dense, row-normalized adjacency (mean neighbor aggregation) -- JAX glue
    # TODO(synk): for large sparse graphs replace with a scalar-prefetch
    # edge-gather / segment-sum kernel instead of the O(N^2) dense adjacency.
    src, dst = edge_index[0], edge_index[1]
    adj = jnp.zeros((N, N), jnp.float32).at[dst, src].add(1.0)
    adj = adj / jnp.maximum(adj.sum(axis=1, keepdims=True), 1.0)

    # cluster mean-pooling matrix (L, N), folded into the LSTM input projection
    onehot = jax.nn.one_hot(clusters, L, dtype=jnp.float32).T
    pool = onehot / jnp.maximum(onehot.sum(axis=1, keepdims=True), 1.0)
    w_ih_eff = (pool.T @ params["w_ih"]).astype(jnp.bfloat16)   # (N, 4*Hs)

    # bf16 MXU operands (halves DMA bytes + VMEM); biases stay f32.
    x_bf = x.astype(jnp.bfloat16)
    adj_bf = adj.astype(jnp.bfloat16)
    w_enc_bf = params["w_enc"].astype(jnp.bfloat16)
    w_mp_bf = params["w_mp"].astype(jnp.bfloat16)

    # ---------------- Kernel 1: time-parallel encoder / gates-x ----------------
    enc_kernel = functools.partial(
        _encoder_gates_kernel, num_mp_layers=num_mp, n_mlp_mp=n_mlp)
    enc_flops = 2 * T * (N * C_in * Hc
                         + num_mp * (N * N * Hc + n_mlp * N * Hc * Hc)
                         + N * Hc * G)
    enc_bytes = (x_bf.size * 2 + adj_bf.size * 2 + w_enc_bf.size * 2
                 + params["b_enc"].size * 4 + w_mp_bf.size * 2
                 + params["b_mp"].size * 4 + w_ih_eff.size * 2
                 + params["b_lstm"].size * 4 + T * Hc * G * 4)

    gates_x = pl.pallas_call(
        enc_kernel,
        out_shape=jax.ShapeDtypeStruct((T, Hc, G), jnp.float32),
        grid_spec=pltpu.PrefetchScalarGridSpec(
            num_scalar_prefetch=0,
            grid=(T,),
            in_specs=[
                pl.BlockSpec((1, N, C_in), lambda t: (t, 0, 0)),          # x[t]
                pl.BlockSpec((N, N), lambda t: (0, 0)),                    # adj
                pl.BlockSpec((C_in, Hc), lambda t: (0, 0)),                # w_enc
                pl.BlockSpec((1, Hc), lambda t: (0, 0)),                   # b_enc
                pl.BlockSpec((num_mp * n_mlp, Hc, Hc), lambda t: (0, 0, 0)),  # w_mp
                pl.BlockSpec((num_mp * n_mlp, 1, Hc), lambda t: (0, 0, 0)),   # b_mp
                pl.BlockSpec((N, G), lambda t: (0, 0)),                    # pool.T @ w_ih
                pl.BlockSpec((1, G), lambda t: (0, 0)),                    # b_lstm
            ],
            out_specs=pl.BlockSpec((1, Hc, G), lambda t: (t, 0, 0)),
        ),
        compiler_params=pltpu.CompilerParams(
            dimension_semantics=("parallel",),        # shardable across TCs
            vmem_limit_bytes=32 * 1024 * 1024,        # fits the v7x 64 MiB budget
        ),
        cost_estimate=pl.CostEstimate(
            flops=enc_flops, transcendentals=0, bytes_accessed=enc_bytes),
    )(x_bf, adj_bf, w_enc_bf, params["b_enc"], w_mp_bf, params["b_mp"],
      w_ih_eff, params["b_lstm"])

    # ---------------- Kernel 2: sequential LSTM recurrence ----------------
    rec_kernel = functools.partial(
        _lstm_recurrence_kernel, seq_len=T, hidden_size=Hs)
    rec_flops = T * (2 * Hc * Hs * G + 8 * Hc * Hs)
    rec_trans = T * (2 * Hc * G + Hc * Hs)
    rec_bytes = T * Hc * G * 4 + Hs * G * 4 + 2 * Hc * Hs * 4

    h_t, c_t = pl.pallas_call(
        rec_kernel,
        out_shape=(
            jax.ShapeDtypeStruct((Hc, Hs), jnp.float32),
            jax.ShapeDtypeStruct((Hc, Hs), jnp.float32),
        ),
        grid_spec=pltpu.PrefetchScalarGridSpec(
            num_scalar_prefetch=0,
            grid=(1,),
            in_specs=[
                pl.BlockSpec((T, Hc, G), lambda i: (0, 0, 0)),   # gates_x
                pl.BlockSpec((Hs, G), lambda i: (0, 0)),         # w_hh
            ],
            out_specs=[
                pl.BlockSpec((Hc, Hs), lambda i: (0, 0)),
                pl.BlockSpec((Hc, Hs), lambda i: (0, 0)),
            ],
        ),
        compiler_params=pltpu.CompilerParams(
            dimension_semantics=("arbitrary",),
            vmem_limit_bytes=32 * 1024 * 1024,
        ),
        cost_estimate=pl.CostEstimate(
            flops=rec_flops, transcendentals=rec_trans, bytes_accessed=rec_bytes),
    )(gates_x, params["w_hh"])

    # ----- Encoder graph-structure bookkeeping (plain JAX glue) -----
    # TODO(synk): original Encoder internals (coarse-edge dedup, per-level attrs)
    # are not specified; these are simple deterministic stand-ins.
    hidden_edge_index = clusters[edge_index]                 # coarse edges (with dups)
    hidden_edge_attr = edge_attr                             # passed through
    edge_indices = (edge_index,)                             # per-level fine edges
    edge_attrs = (edge_attr,)
    edge_indices_f2c = jnp.stack([jnp.arange(N, dtype=jnp.int32), clusters])
    position = centroids
    node_attrs = (x[-1],)                                    # last-step fine node attrs
    return (h_t, c_t, hidden_edge_index, hidden_edge_attr, edge_indices,
            edge_attrs, edge_indices_f2c, position, node_attrs, clusters)


# ----------------------------------------------------------------------------
# Pure-JAX reference of the hot path (original math order, same bf16 MXU casts)
# ----------------------------------------------------------------------------
def _reference(x, adj, pool, params, cfg):
    Hc, Hs = cfg["hidden_channels"], cfg["hidden_size"]
    num_mp, n_mlp = cfg["num_mp_layers"], cfg["n_mlp_mp"]
    bf = jnp.bfloat16

    def mm(a, b):
        return jnp.dot(a.astype(bf), b.astype(bf),
                       preferred_element_type=jnp.float32)

    h_t = jnp.zeros((Hc, Hs), jnp.float32)
    c_t = jnp.zeros((Hc, Hs), jnp.float32)
    for t in range(x.shape[0]):
        h = jnp.maximum(mm(x[t], params["w_enc"]) + params["b_enc"], 0.0)
        for l in range(num_mp):
            agg = mm(adj, h)
            for m in range(n_mlp):
                idx = l * n_mlp + m
                agg = jnp.maximum(mm(agg, params["w_mp"][idx]) + params["b_mp"][idx], 0.0)
            h = agg
        hidden_input = pool @ h                                  # (L, Hc)
        gates = (mm(hidden_input.T, params["w_ih"])
                 + h_t @ params["w_hh"] + params["b_lstm"])      # (Hc, 4*Hs)
        i_g = jax.nn.sigmoid(gates[:, 0 * Hs:1 * Hs])
        f_g = jax.nn.sigmoid(gates[:, 1 * Hs:2 * Hs])
        g_g = jnp.tanh(gates[:, 2 * Hs:3 * Hs])
        o_g = jax.nn.sigmoid(gates[:, 3 * Hs:4 * Hs])
        c_t = f_g * c_t + i_g * g_g
        h_t = o_g * jnp.tanh(c_t)
    return h_t, c_t


# ----------------------------------------------------------------------------
# Main
# ----------------------------------------------------------------------------
if __name__ == "__main__":
    T, N, C_in = 4, 16, 4          # seq len, fine nodes, input node channels
    Hc, Hs, L = 8, 32, 8           # hidden_channels, hidden_size, latent_space
    num_mp, n_mlp = 2, 2

    key = jax.random.PRNGKey(0)
    ks = jax.random.split(key, 10)

    # graph: ring graph over N nodes (bidirectional)
    fwd = jnp.stack([jnp.arange(N, dtype=jnp.int32),
                     (jnp.arange(N, dtype=jnp.int32) + 1) % N])
    edge_index = jnp.concatenate([fwd, fwd[::-1]], axis=1)          # (2, 2N)
    pos = jax.random.normal(ks[0], (N, 2), jnp.float32)
    d = pos[edge_index[1]] - pos[edge_index[0]]
    edge_attr = jnp.concatenate(
        [d, jnp.linalg.norm(d, axis=1, keepdims=True)], axis=1)     # (2N, 3)

    x = jax.random.normal(ks[1], (T, N, C_in), jnp.float32)

    clusters = (jnp.arange(N, dtype=jnp.int32) % L)                 # (N,)
    onehot = jax.nn.one_hot(clusters, L, dtype=jnp.float32).T
    pool_mat = onehot / jnp.maximum(onehot.sum(axis=1, keepdims=True), 1.0)
    centroids = pool_mat @ pos                                      # (L, 2)

    s = 0.3
    params = {
        "w_enc": s * jax.random.normal(ks[2], (C_in, Hc), jnp.float32),
        "b_enc": s * jax.random.normal(ks[3], (1, Hc), jnp.float32),
        "w_mp": s * jax.random.normal(ks[4], (num_mp * n_mlp, Hc, Hc), jnp.float32),
        "b_mp": s * jax.random.normal(ks[5], (num_mp * n_mlp, 1, Hc), jnp.float32),
        "w_ih": s * jax.random.normal(ks[6], (L, 4 * Hs), jnp.float32),
        "w_hh": s * jax.random.normal(ks[7], (Hs, 4 * Hs), jnp.float32),
        "b_lstm": s * jax.random.normal(ks[8], (1, 4 * Hs), jnp.float32),
    }
    cfg = {
        "latent_space": L, "input_node_channel": C_in, "num_mp_layers": num_mp,
        "clusters": clusters, "centroids": centroids,
        "hidden_channels": Hc, "n_mlp_mp": n_mlp, "hidden_size": Hs,
    }

    out = gae_lstm_encoder_forward(x, edge_index, edge_attr, pos, params, cfg)
    h_t, c_t = out[0], out[1]
    jax.block_until_ready((h_t, c_t))

    # correctness check against a pure-JAX reference of the original math
    src, dst = edge_index[0], edge_index[1]
    adj = jnp.zeros((N, N), jnp.float32).at[dst, src].add(1.0)
    adj = adj / jnp.maximum(adj.sum(axis=1, keepdims=True), 1.0)
    h_ref, c_ref = _reference(x, adj, pool_mat, params, cfg)
    assert jnp.allclose(h_t, h_ref, rtol=2e-2, atol=2e-2)
    assert jnp.allclose(c_t, c_ref, rtol=2e-2, atol=2e-2)

    print("KERNEL_OK")
</pallas_src>

<mosaic_0001>
module attributes {stable_mosaic.version = 11 : i64} {
  func.func @_encoder_gates_kernel(%arg0: i32, %arg1: memref<1x16x4xbf16, #tpu.memory_space<vmem>>, %arg2: memref<16x16xbf16, #tpu.memory_space<vmem>>, %arg3: memref<4x8xbf16, #tpu.memory_space<vmem>>, %arg4: memref<1x8xf32, #tpu.memory_space<vmem>>, %arg5: memref<4x8x8xbf16, #tpu.memory_space<vmem>>, %arg6: memref<4x1x8xf32, #tpu.memory_space<vmem>>, %arg7: memref<16x128xbf16, #tpu.memory_space<vmem>>, %arg8: memref<1x128xf32, #tpu.memory_space<vmem>>, %arg9: memref<1x8x128xf32, #tpu.memory_space<vmem>>) attributes {dimension_semantics = [#tpu.dimension_semantics<parallel>], iteration_bounds = array<i64: 4>, scalar_prefetch = 0 : i64, scratch_operands = 0 : i64, tpu.core_type = #tpu.core_type<tc>, window_params = [{transform_indices = @transform_0, window_bounds = array<i64: 1, 16, 4>}, {pipeline_mode = #tpu.pipeline_mode<synchronous>, transform_indices = @transform_1, window_bounds = array<i64: 16, 16>}, {pipeline_mode = #tpu.pipeline_mode<synchronous>, transform_indices = @transform_2, window_bounds = array<i64: 4, 8>}, {pipeline_mode = #tpu.pipeline_mode<synchronous>, transform_indices = @transform_3, window_bounds = array<i64: 1, 8>}, {pipeline_mode = #tpu.pipeline_mode<synchronous>, transform_indices = @transform_4, window_bounds = array<i64: 4, 8, 8>}, {pipeline_mode = #tpu.pipeline_mode<synchronous>, transform_indices = @transform_5, window_bounds = array<i64: 4, 1, 8>}, {pipeline_mode = #tpu.pipeline_mode<synchronous>, transform_indices = @transform_6, window_bounds = array<i64: 16, 128>}, {pipeline_mode = #tpu.pipeline_mode<synchronous>, transform_indices = @transform_7, window_bounds = array<i64: 1, 128>}, {transform_indices = @transform_8, window_bounds = array<i64: 1, 8, 128>}]} {
    %c0 = arith.constant 0 : index
    %c0_0 = arith.constant 0 : index
    %c0_1 = arith.constant 0 : index
    %0 = vector.load %arg1[%c0, %c0_0, %c0_1] : memref<1x16x4xbf16, #tpu.memory_space<vmem>>, vector<1x16x4xbf16>
    %1 = vector.shape_cast %0 : vector<1x16x4xbf16> to vector<16x4xbf16>
    %c0_2 = arith.constant 0 : index
    %c0_3 = arith.constant 0 : index
    %2 = vector.load %arg3[%c0_2, %c0_3] : memref<4x8xbf16, #tpu.memory_space<vmem>>, vector<4x8xbf16>
    %cst = arith.constant dense<0.000000e+00> : vector<16x8xf32>
    %3 = tpu.matmul %1, %2, %cst {dimension_numbers = #tpu.dot_dimension_numbers<[1], [0], [0], [1], [0, 0, 1, 1], [], []>} : vector<16x4xbf16>, vector<4x8xbf16>, vector<16x8xf32> -> vector<16x8xf32>
    %c0_4 = arith.constant 0 : index
    %c0_5 = arith.constant 0 : index
    %4 = vector.load %arg4[%c0_4, %c0_5] : memref<1x8xf32, #tpu.memory_space<vmem>>, vector<1x8xf32>
    %5 = vector.broadcast %4 : vector<1x8xf32> to vector<16x8xf32>
    %6 = arith.addf %3, %5 : vector<16x8xf32>
    %cst_6 = arith.constant 0.000000e+00 : f32
    %7 = vector.broadcast %cst_6 : f32 to vector<16x8xf32>
    %8 = arith.maximumf %6, %7 : vector<16x8xf32>
    %c0_7 = arith.constant 0 : index
    %c0_8 = arith.constant 0 : index
    %9 = vector.load %arg2[%c0_7, %c0_8] : memref<16x16xbf16, #tpu.memory_space<vmem>>, vector<16x16xbf16>
    %10 = arith.truncf %8 : vector<16x8xf32> to vector<16x8xbf16>
    %cst_9 = arith.constant dense<0.000000e+00> : vector<16x8xf32>
    %11 = tpu.matmul %9, %10, %cst_9 {dimension_numbers = #tpu.dot_dimension_numbers<[1], [0], [0], [1], [0, 0, 1, 1], [], []>} : vector<16x16xbf16>, vector<16x8xbf16>, vector<16x8xf32> -> vector<16x8xf32>
    %12 = arith.truncf %11 : vector<16x8xf32> to vector<16x8xbf16>
    %c0_10 = arith.constant 0 : index
    %c0_11 = arith.constant 0 : index
    %c0_12 = arith.constant 0 : index
    %13 = vector.load %arg5[%c0_10, %c0_11, %c0_12] : memref<4x8x8xbf16, #tpu.memory_space<vmem>>, vector<1x8x8xbf16>
    %14 = vector.shape_cast %13 : vector<1x8x8xbf16> to vector<8x8xbf16>
    %cst_13 = arith.constant dense<0.000000e+00> : vector<16x8xf32>
    %15 = tpu.matmul %12, %14, %cst_13 {dimension_numbers = #tpu.dot_dimension_numbers<[1], [0], [0], [1], [0, 0, 1, 1], [], []>} : vector<16x8xbf16>, vector<8x8xbf16>, vector<16x8xf32> -> vector<16x8xf32>
    %c0_14 = arith.constant 0 : index
    %c0_15 = arith.constant 0 : index
    %c0_16 = arith.constant 0 : index
    %16 = vector.load %arg6[%c0_14, %c0_15, %c0_16] : memref<4x1x8xf32, #tpu.memory_space<vmem>>, vector<1x1x8xf32>
    %17 = vector.shape_cast %16 : vector<1x1x8xf32> to vector<1x8xf32>
    %18 = vector.broadcast %17 : vector<1x8xf32> to vector<16x8xf32>
    %19 = arith.addf %15, %18 : vector<16x8xf32>
    %cst_17 = arith.constant 0.000000e+00 : f32
    %20 = vector.broadcast %cst_17 : f32 to vector<16x8xf32>
    %21 = arith.maximumf %19, %20 : vector<16x8xf32>
    %22 = arith.truncf %21 : vector<16x8xf32> to vector<16x8xbf16>
    %c1 = arith.constant 1 : index
    %c0_18 = arith.constant 0 : index
    %c0_19 = arith.constant 0 : index
    %23 = vector.load %arg5[%c1, %c0_18, %c0_19] : memref<4x8x8xbf16, #tpu.memory_space<vmem>>, vector<1x8x8xbf16>
    %24 = vector.shape_cast %23 : vector<1x8x8xbf16> to vector<8x8xbf16>
    %cst_20 = arith.constant dense<0.000000e+00> : vector<16x8xf32>
    %25 = tpu.matmul %22, %24, %cst_20 {dimension_numbers = #tpu.dot_dimension_numbers<[1], [0], [0], [1], [0, 0, 1, 1], [], []>} : vector<16x8xbf16>, vector<8x8xbf16>, vector<16x8xf32> -> vector<16x8xf32>
    %c1_21 = arith.constant 1 : index
    %c0_22 = arith.constant 0 : index
    %c0_23 = arith.constant 0 : index
    %26 = vector.load %arg6[%c1_21, %c0_22, %c0_23] : memref<4x1x8xf32, #tpu.memory_space<vmem>>, vector<1x1x8xf32>
    %27 = vector.shape_cast %26 : vector<1x1x8xf32> to vector<1x8xf32>
    %28 = vector.broadcast %27 : vector<1x8xf32> to vector<16x8xf32>
    %29 = arith.addf %25, %28 : vector<16x8xf32>
    %cst_24 = arith.constant 0.000000e+00 : f32
    %30 = vector.broadcast %cst_24 : f32 to vector<16x8xf32>
    %31 = arith.maximumf %29, %30 : vector<16x8xf32>
    %c0_25 = arith.constant 0 : index
    %c0_26 = arith.constant 0 : index
    %32 = vector.load %arg2[%c0_25, %c0_26] : memref<16x16xbf16, #tpu.memory_space<vmem>>, vector<16x16xbf16>
    %33 = arith.truncf %31 : vector<16x8xf32> to vector<16x8xbf16>
    %cst_27 = arith.constant dense<0.000000e+00> : vector<16x8xf32>
    %34 = tpu.matmul %32, %33, %cst_27 {dimension_numbers = #tpu.dot_dimension_numbers<[1], [0], [0], [1], [0, 0, 1, 1], [], []>} : vector<16x16xbf16>, vector<16x8xbf16>, vector<16x8xf32> -> vector<16x8xf32>
    %35 = arith.truncf %34 : vector<16x8xf32> to vector<16x8xbf16>
    %c2 = arith.constant 2 : index
    %c0_28 = arith.constant 0 : index
    %c0_29 = arith.constant 0 : index
    %36 = vector.load %arg5[%c2, %c0_28, %c0_29] : memref<4x8x8xbf16, #tpu.memory_space<vmem>>, vector<1x8x8xbf16>
    %37 = vector.shape_cast %36 : vector<1x8x8xbf16> to vector<8x8xbf16>
    %cst_30 = arith.constant dense<0.000000e+00> : vector<16x8xf32>
    %38 = tpu.matmul %35, %37, %cst_30 {dimension_numbers = #tpu.dot_dimension_numbers<[1], [0], [0], [1], [0, 0, 1, 1], [], []>} : vector<16x8xbf16>, vector<8x8xbf16>, vector<16x8xf32> -> vector<16x8xf32>
    %c2_31 = arith.constant 2 : index
    %c0_32 = arith.constant 0 : index
    %c0_33 = arith.constant 0 : index
    %39 = vector.load %arg6[%c2_31, %c0_32, %c0_33] : memref<4x1x8xf32, #tpu.memory_space<vmem>>, vector<1x1x8xf32>
    %40 = vector.shape_cast %39 : vector<1x1x8xf32> to vector<1x8xf32>
    %41 = vector.broadcast %40 : vector<1x8xf32> to vector<16x8xf32>
    %42 = arith.addf %38, %41 : vector<16x8xf32>
    %cst_34 = arith.constant 0.000000e+00 : f32
    %43 = vector.broadcast %cst_34 : f32 to vector<16x8xf32>
    %44 = arith.maximumf %42, %43 : vector<16x8xf32>
    %45 = arith.truncf %44 : vector<16x8xf32> to vector<16x8xbf16>
    %c3 = arith.constant 3 : index
    %c0_35 = arith.constant 0 : index
    %c0_36 = arith.constant 0 : index
    %46 = vector.load %arg5[%c3, %c0_35, %c0_36] : memref<4x8x8xbf16, #tpu.memory_space<vmem>>, vector<1x8x8xbf16>
    %47 = vector.shape_cast %46 : vector<1x8x8xbf16> to vector<8x8xbf16>
    %cst_37 = arith.constant dense<0.000000e+00> : vector<16x8xf32>
    %48 = tpu.matmul %45, %47, %cst_37 {dimension_numbers = #tpu.dot_dimension_numbers<[1], [0], [0], [1], [0, 0, 1, 1], [], []>} : vector<16x8xbf16>, vector<8x8xbf16>, vector<16x8xf32> -> vector<16x8xf32>
    %c3_38 = arith.constant 3 : index
    %c0_39 = arith.constant 0 : index
    %c0_40 = arith.constant 0 : index
    %49 = vector.load %arg6[%c3_38, %c0_39, %c0_40] : memref<4x1x8xf32, #tpu.memory_space<vmem>>, vector<1x1x8xf32>
    %50 = vector.shape_cast %49 : vector<1x1x8xf32> to vector<1x8xf32>
    %51 = vector.broadcast %50 : vector<1x8xf32> to vector<16x8xf32>
    %52 = arith.addf %48, %51 : vector<16x8xf32>
    %cst_41 = arith.constant 0.000000e+00 : f32
    %53 = vector.broadcast %cst_41 : f32 to vector<16x8xf32>
    %54 = arith.maximumf %52, %53 : vector<16x8xf32>
    %55 = arith.truncf %54 : vector<16x8xf32> to vector<16x8xbf16>
    %c0_42 = arith.constant 0 : index
    %c0_43 = arith.constant 0 : index
    %56 = vector.load %arg7[%c0_42, %c0_43] : memref<16x128xbf16, #tpu.memory_space<vmem>>, vector<16x128xbf16>
    %cst_44 = arith.constant dense<0.000000e+00> : vector<8x128xf32>
    %57 = tpu.matmul %55, %56, %cst_44 {dimension_numbers = #tpu.dot_dimension_numbers<[0], [0], [1], [1], [0, 1, 1, 1], [], []>} : vector<16x8xbf16>, vector<16x128xbf16>, vector<8x128xf32> -> vector<8x128xf32>
    %c0_45 = arith.constant 0 : index
    %c0_46 = arith.constant 0 : index
    %58 = vector.load %arg8[%c0_45, %c0_46] : memref<1x128xf32, #tpu.memory_space<vmem>>, vector<1x128xf32>
    %59 = vector.broadcast %58 : vector<1x128xf32> to vector<8x128xf32>
    %60 = arith.addf %57, %59 : vector<8x128xf32>
    %c0_47 = arith.constant 0 : index
    %c0_48 = arith.constant 0 : index
    %c0_49 = arith.constant 0 : index
    %61 = vector.load %arg9[%c0_47, %c0_48, %c0_49] : memref<1x8x128xf32, #tpu.memory_space<vmem>>, vector<1x8x128xf32>
    %62 = vector.shape_cast %61 : vector<1x8x128xf32> to vector<8x128xf32>
    %63 = vector.shape_cast %60 : vector<8x128xf32> to vector<1x8x128xf32>
    tpu.vector_store %arg9[%c0_47, %c0_48, %c0_49], %63 {strides = array<i32>} : memref<1x8x128xf32, #tpu.memory_space<vmem>>, vector<1x8x128xf32>,
    return
  }
  func.func @transform_0(%arg0: i32) -> (i32, i32, i32) {
    %c0_i32 = arith.constant 0 : i32
    %c0_i32_0 = arith.constant 0 : i32
    %c0_i32_1 = arith.constant 0 : i32
    return %arg0, %c0_i32, %c0_i32_0 : i32, i32, i32
  }
  func.func @transform_1(%arg0: i32) -> (i32, i32) {
    %c0_i32 = arith.constant 0 : i32
    %c0_i32_0 = arith.constant 0 : i32
    %c0_i32_1 = arith.constant 0 : i32
    return %c0_i32, %c0_i32_0 : i32, i32
  }
  func.func @transform_2(%arg0: i32) -> (i32, i32) {
    %c0_i32 = arith.constant 0 : i32
    %c0_i32_0 = arith.constant 0 : i32
    %c0_i32_1 = arith.constant 0 : i32
    return %c0_i32, %c0_i32_0 : i32, i32
  }
  func.func @transform_3(%arg0: i32) -> (i32, i32) {
    %c0_i32 = arith.constant 0 : i32
    %c0_i32_0 = arith.constant 0 : i32
    %c0_i32_1 = arith.constant 0 : i32
    return %c0_i32, %c0_i32_0 : i32, i32
  }
  func.func @transform_4(%arg0: i32) -> (i32, i32, i32) {
    %c0_i32 = arith.constant 0 : i32
    %c0_i32_0 = arith.constant 0 : i32
    %c0_i32_1 = arith.constant 0 : i32
    %c0_i32_2 = arith.constant 0 : i32
    return %c0_i32, %c0_i32_0, %c0_i32_1 : i32, i32, i32
  }
  func.func @transform_5(%arg0: i32) -> (i32, i32, i32) {
    %c0_i32 = arith.constant 0 : i32
    %c0_i32_0 = arith.constant 0 : i32
    %c0_i32_1 = arith.constant 0 : i32
    %c0_i32_2 = arith.constant 0 : i32
    return %c0_i32, %c0_i32_0, %c0_i32_1 : i32, i32, i32
  }
  func.func @transform_6(%arg0: i32) -> (i32, i32) {
    %c0_i32 = arith.constant 0 : i32
    %c0_i32_0 = arith.constant 0 : i32
    %c0_i32_1 = arith.constant 0 : i32
    return %c0_i32, %c0_i32_0 : i32, i32
  }
  func.func @transform_7(%arg0: i32) -> (i32, i32) {
    %c0_i32 = arith.constant 0 : i32
    %c0_i32_0 = arith.constant 0 : i32
    %c0_i32_1 = arith.constant 0 : i32
    return %c0_i32, %c0_i32_0 : i32, i32
  }
  func.func @transform_8(%arg0: i32) -> (i32, i32, i32) {
    %c0_i32 = arith.constant 0 : i32
    %c0_i32_0 = arith.constant 0 : i32
    %c0_i32_1 = arith.constant 0 : i32
    return %arg0, %c0_i32, %c0_i32_0 : i32, i32, i32
  }
}

</mosaic_0001>

<bundles_post_ra>
// kernel: tpu_custom_call.1
= control target key start
LH: loop header
LB: loop body
LE: loop exit
PB: predicated region body
PF: predicated region fallthrough
CT: control target
= control target key end

     0   :  { %13 = vsyncpa [#allocation3], 0  ;;  %s1285_s0 = inlined_call_operand.vmem [shape: bf16[4,16,4], index: 0, kind: input, shape index: {}]   ;;  %s1286_s1 = inlined_call_operand.vmem [shape: bf16[16,16], index: 1, kind: input, shape index: {}]   ;;  %s1287_s2 = inlined_call_operand.vmem [shape: bf16[4,8], index: 2, kind: input, shape index: {}]   ;;  %s1288_s3 = inlined_call_operand.vmem [shape: f32[1,8], index: 3, kind: input, shape index: {}]   ;;  %s1289_s4 = inlined_call_operand.vmem [shape: bf16[4,8,8], index: 4, kind: input, shape index: {}]   ;;  %s1290_s5 = inlined_call_operand.vmem [shape: f32[4,1,8], index: 5, kind: input, shape index: {}]   ;;  %s1291_s6 = inlined_call_operand.vmem [shape: bf16[16,128], index: 6, kind: input, shape index: {}]   ;;  %s1292_s7 = inlined_call_operand.vmem [shape: f32[1,128], index: 7, kind: input, shape index: {}]   ;;  %s1293_s8 = inlined_call_operand.hbm [shape: f32[4,8,128], index: 8, kind: output, shape index: {}]  }
   0x1   :  { %15 = vsyncpa [#allocation3 + $0x1], 0  ;;  %s1111_s27 = smov 0   ;;  %s1113_s28 = smov 0  }
   0x2   :  { %s1115_s29 = smov 0   ;;  %s1117_s30 = smov 0  }
   0x3 LB: > { %s1132_s9 = sadd.s32 4294967295, %s1061_s30   ;;  %s855_s10 = sadd.s32 4294967294, %s1061_s30   ;;  %s1061_s30 = sphi %s1117_s30, %s1299_s30   ;;  %s1057_s29 = sphi %s1115_s29, %s1298_s29   ;;  %s1053_s28 = sphi %s1113_s28, %s1297_s28   ;;  %s1049_s27 = sphi %s1111_s27, %s1296_s27  }
   0x4   : > { %s1136_s11 = sadd.s32 1, %s1061_s30   ;;  %s201_s12 = sadd.s32 1, %s1057_s29 }
   0x5   : > { %s198_s13 = ssub.s32 %s1061_s30, %s1136_s11  ;;  %p211_p0 = scmp.ne.s32.totalorder %s1057_s29, %s1053_s28 }
   0x6   : > { %p199_p1 = scmp.eq.s32.totalorder %s198_s13, 0  ;;  %p212_p2 = scmp.eq.s32.totalorder %s1132_s9, 3 }
   0x7   : > { %p217_p3 = scmp.ne.s32.totalorder %s1053_s28, %s1049_s27  ;;  %p218_p4 = scmp.eq.s32.totalorder %s855_s10, 3 }
   0x8   : > { %s1147_s14 = scalar_select %p199_p1, %s1057_s29, %s201_s12  }
   0x9   : > { %p1149_p5 = por %p212_p2, %p211_p0  ;;  %p1153_p6 = por %p218_p4, %p217_p3 }
   0xa   : > { %p858_p7 = scmp.ge.s32.totalorder %s1061_s30, 1  ;;  %p265_p8 = scmp.lt.s32.totalorder %s1061_s30, 5 }
   0xc   : > { %p266_p9 = pnand %p858_p7, %p265_p8 }
   0xd   : > { %v307_v0 = vld [vmem:[%s1287_s2] sm:$0x3] (!%p266_p9)  ;;  %vm324_vm0 = vcmask (!%p266_p9), 1041408   ;;  %p299_p10 = scmp.lt.s32.totalorder (!%p266_p9), %s1132_s9, 3  ;;  %v1063_v1 = vmov (!%p266_p9), 0.0   ;;  %vm1064_vm1 = vmmov (!%p266_p9), 0  }
   0xe   : > { %269 = sbr.rel (%p266_p9) target bundleno = 1895 (0x767), region = 52  ;;  %906 = vmatprep.subr.bf16.mxu0 (!%p266_p9), %v1063_v1  ;;  %v326_v2 = vsel (!%p266_p9), %vm324_vm0, %v307_v0, 0  ;;  %908 = vmatprep.mubr.msk.bf16.mxu0 (!%p266_p9), %vm1064_vm1, %v1063_v1  ;;  %vm320_vm2 = vcmask (!%p266_p9), 31744   ;;  %v862_v4 = vld [vmem:[%s1288_s3] ss:$0 sm:$0xff] (!%p266_p9)  ;;  %vm379_vm3 = vcmask (!%p266_p9), 130048  }
   0xf   : > { %907 = vmatpush3.bf16.msra.mxu0 (!%p266_p9), %v326_v2  ;;  %912 = vmatprep.subr.bf16.mxu1 (!%p266_p9), %v1063_v1  ;;  %v997_v14 = vld [vmem:[%s1286_s1] sm:$0xff] (!%p266_p9)   ;;  %vm437_vm4 = vcmask (!%p266_p9), 1043456   ;;  %vm433_vm5 = vcmask (!%p266_p9), 64512   ;;  %v874_v44 = vld [vmem:[%s1289_s4 + $0x8] sm:$0xf] (!%p266_p9)  ;;  %s886_s24 = sshll.u32 (!%p266_p9), %s1132_s9, 7 }
  0x10   : > { %914 = vmatprep.mubr.msk.bf16.mxu1 (!%p266_p9), %vm1064_vm1, %v1063_v1  ;;  %918 = vmatprep.subr.bf16.mxu0 (!%p266_p9), %v1063_v1  ;;  %v425_v15 = vld [vmem:[%s1289_s4] sm:$0xf] (!%p266_p9)  ;;  %v869_v22 = vld [vmem:[%s1289_s4 + $0x4] sm:$0xf] (!%p266_p9)  ;;  %v601_v45 = vsel (!%p266_p9), %vm437_vm4, %v874_v44, 0  ;;  %s1243_s13 = scalar_lea.hbm (!%p266_p9), %s1293_s8, %s886_s24  ;;  %s1065_s18 = smov (!%p266_p9), [#allocation2]  }
  0x11   : > { %v439_v16 = vsel (!%p266_p9), %vm437_vm4, %v425_v15, 0  ;;  %v499_v23 = vsel (!%p266_p9), %vm437_vm4, %v869_v22, 0  ;;  %v867_v24 = vld [vmem:[%s1290_s5] ss:$0 sm:$0xff] (!%p266_p9)  ;;  %v871_v34 = vld [vmem:[%s1290_s5 + $0x1] ss:$0 sm:$0xff] (!%p266_p9) }
  0x12   : > { %v878_v51 = vld [vmem:[%s1289_s4 + $0xc] sm:$0xf] (!%p266_p9)  ;;  %v876_v53 = vld [vmem:[%s1290_s5 + $0x2] ss:$0 sm:$0xff] (!%p266_p9)  ;;  %v880_v0 = vld [vmem:[%s1290_s5 + $0x3] ss:$0 sm:$0xff] (!%p266_p9) }
  0x13   : > { %v661_v52 = vsel (!%p266_p9), %vm437_vm4, %v878_v51, 0  ;;  %v998_v63 = vld [vmem:[%s1291_s6] sm:$0xff] (!%p266_p9)  }
  0x15   : > { %s300_s19 = scalar_select %p299_p10, %s1132_s9, 3 }
  0x17   : > { %s889_s20 = sshll.u32 %s300_s19, 3  ;;  %s1003_s19 = sshll.u32 %s1065_s18, 4  ;;  %s1004_s19 = int_to_ptr.vmem [resolvable:$false] %s1003_s19 }
  0x18   : > { %s303_s23 = scalar_lea.vmem %s1285_s0, %s889_s20  ;;  %s296_s20 = sand.u32 1, %s1053_s28  }
  0x19   : > { %v996_v3 = vld [vmem:[%s303_s23] sm:$0xff]   ;;  %s859_s21 = sshll.u32 %s296_s20, 3  ;;  %s783_s17 = scalar_lea.sflag [#allocation3], %s296_s20 }
  0x1a   : > { %909 = vmatmul.mubr.msk.bf16.vlgmr.msra.gmra.mrb[0].mxu0 %vm320_vm2, %v996_v3  ;;  %s298_s25 = scalar_lea.vmem [#allocation2], %s859_s21  ;;  %s1005_s21 = scalar_lea.vmem %s1004_s19, 256 }
  0x1b   : > { %920 = vmatprep.mubr.msk.bf16.mxu0 %vm1064_vm1, %v1063_v1  ;;  %919 = vmatpush3.bf16.msra.mxu0 %v439_v16  ;;  %s796_s26 = sshll.u32 %s298_s25, 4  ;;  %s1245_s26 = int_to_ptr.vmem [resolvable:$true] %s796_s26 }
  0x1c   : > { %930 = vmatprep.subr.bf16.mxu0 %v1063_v1  ;;  %s999_s9 = scalar_lea.vmem %s1245_s26, 128  ;;  %p1006_p0 = scmp.lt.s32.totalorder %s1245_s26, %s1004_s19 }
  0x1d   : > { %p1000_p11 = scmp.ne.s32.totalorder %s1245_s26, %s999_s9  ;;  %p1007_p1 = scmp.lt.s32.totalorder %s1005_s21, %s999_s9 }
  0x1f   : > { %p1001_p12 = pnand %p1000_p11, %p1149_p5  ;;  %p1008_p2 = por %p1007_p1, %p1006_p0 }
  0x21   : > { %p1002_p13 = pneg %p1001_p12 }
  0x23   : > { %p1009_p3 = pnand %p1008_p2, %p1002_p13 }
  0xed   : > { %v362_v5 = vpop.f32.mrb[0].mxu0 }
  0xee   : > { %v363_v6 = vadd.f32 %v862_v4, %v362_v5  ;;  %v910_v7 = vpop.f32.mrb[1].mxu0 }
  0xef   : > { %v365_v8 = vpop.f32.mrb[2].mxu0 }
  0xf0   : > { %v366_v9 = vadd.f32 %v862_v4, %v365_v8  ;;  %v911_v10 = vpop.f32.mrb[3].mxu0  ;;  %v369_v11 = vmax.f32 %v363_v6, 0.0 }
  0xf2   : > { %v370_v12 = vmax.f32 %v366_v9, 0.0 }
  0xf4   : > { %v373_v13 = vpack.c.bf16 %v370_v12, %v369_v11  ;;  %v882_v11 = vld [vmem:[%s1292_s7] ss:$0 sm:$0xff] }
  0xf6   : > { %913 = vmatpush3.bf16.msra.mxu1 %v373_v13 }
  0xf7   : > { %924 = vmatprep.subr.bf16.mxu1 %v1063_v1 }
  0xf9   : > { %915 = vmatmul.mubr.msk.bf16.vlgmr.msra.gmra.mrb[0].mxu1 %vm379_vm3, %v997_v14 }
  0xfa   : > { %926 = vmatprep.mubr.msk.bf16.mxu1 %vm1064_vm1, %v1063_v1  ;;  %925 = vmatpush3.bf16.msra.mxu1 %v499_v23 }
  0xfb   : > { %936 = vmatprep.subr.bf16.mxu1 %v1063_v1 }
 0x1cc   : > { %v417_v17 = vpop.f32.mrb[0].mxu1 }
 0x1cd   : > { %v916_v18 = vpop.f32.mrb[1].mxu1 }
 0x1ce   : > { %v420_v19 = vpop.f32.mrb[2].mxu1 }
 0x1cf   : > { %v424_v20 = vpack.c.bf16 %v420_v19, %v417_v17  ;;  %v917_v21 = vpop.f32.mrb[3].mxu1 }
 0x1d1   : > { %921 = vmatmul.mubr.msk.bf16.vlgmr.msra.gmra.mrb[4].mxu0 %vm433_vm5, %v424_v20 }
 0x1d2   : > { %932 = vmatprep.mubr.msk.bf16.mxu0 %vm1064_vm1, %v1063_v1 }
 0x2a4   : > { %v475_v25 = vpop.f32.mrb[4].mxu0 }
 0x2a5   : > { %v476_v26 = vadd.f32 %v867_v24, %v475_v25  ;;  %v922_v27 = vpop.f32.mrb[5].mxu0 }
 0x2a6   : > { %v478_v28 = vpop.f32.mrb[6].mxu0 }
 0x2a7   : > { %v479_v29 = vadd.f32 %v867_v24, %v478_v28  ;;  %v923_v30 = vpop.f32.mrb[7].mxu0  ;;  %v482_v31 = vmax.f32 %v476_v26, 0.0 }
 0x2a9   : > { %v483_v32 = vmax.f32 %v479_v29, 0.0 }
 0x2ab   : > { %v484_v33 = vpack.c.bf16 %v483_v32, %v482_v31 }
 0x2ad   : > { %927 = vmatmul.mubr.msk.bf16.vlgmr.msra.gmra.mrb[4].mxu1 %vm433_vm5, %v484_v33 }
 0x2ae   : > { %938 = vmatprep.mubr.msk.bf16.mxu1 %vm1064_vm1, %v1063_v1  ;;  %937 = vmatpush3.bf16.msra.mxu1 %v601_v45 }
 0x2af   : > { %948 = vmatprep.subr.bf16.mxu1 %v1063_v1 }
 0x380   : > { %v535_v35 = vpop.f32.mrb[4].mxu1 }
 0x381   : > { %v536_v36 = vadd.f32 %v871_v34, %v535_v35  ;;  %v928_v37 = vpop.f32.mrb[5].mxu1 }
 0x382   : > { %v538_v38 = vpop.f32.mrb[6].mxu1 }
 0x383   : > { %v539_v39 = vadd.f32 %v871_v34, %v538_v38  ;;  %v929_v40 = vpop.f32.mrb[7].mxu1  ;;  %v542_v41 = vmax.f32 %v536_v36, 0.0 }
 0x385   : > { %v543_v42 = vmax.f32 %v539_v39, 0.0 }
 0x387   : > { %v544_v43 = vpack.c.bf16 %v543_v42, %v542_v41 }
 0x389   : > { %931 = vmatpush3.bf16.msra.mxu0 %v544_v43 }
 0x38a   : > { %942 = vmatprep.subr.bf16.mxu0 %v1063_v1 }
 0x38c   : > { %933 = vmatmul.mubr.msk.bf16.vlgmr.msra.gmra.mrb[8].mxu0 %vm379_vm3, %v997_v14 }
 0x38d   : > { %944 = vmatprep.mubr.msk.bf16.mxu0 %vm1064_vm1, %v1063_v1  ;;  %943 = vmatpush3.bf16.msra.mxu0 %v661_v52 }
 0x45f   : > { %v579_v46 = vpop.f32.mrb[8].mxu0 }
 0x460   : > { %v934_v47 = vpop.f32.mrb[9].mxu0 }
 0x461   : > { %v582_v48 = vpop.f32.mrb[10].mxu0 }
 0x462   : > { %v586_v49 = vpack.c.bf16 %v582_v48, %v579_v46  ;;  %v935_v50 = vpop.f32.mrb[11].mxu0 }
 0x464   : > { %939 = vmatmul.mubr.msk.bf16.vlgmr.msra.gmra.mrb[8].mxu1 %vm433_vm5, %v586_v49 }
 0x465   : > { %950 = vmatprep.mubr.msk.bf16.mxu1 %vm1064_vm1, %v1063_v1  ;;  %949 = vmatpush3.bf16.msra.mxu1 %v998_v63 }
 0x537   : > { %v637_v54 = vpop.f32.mrb[8].mxu1 }
 0x538   : > { %v638_v55 = vadd.f32 %v876_v53, %v637_v54  ;;  %v940_v56 = vpop.f32.mrb[9].mxu1 }
 0x539   : > { %v640_v57 = vpop.f32.mrb[10].mxu1 }
 0x53a   : > { %v641_v58 = vadd.f32 %v876_v53, %v640_v57  ;;  %v941_v59 = vpop.f32.mrb[11].mxu1  ;;  %v644_v60 = vmax.f32 %v638_v55, 0.0 }
 0x53c   : > { %v645_v61 = vmax.f32 %v641_v58, 0.0 }
 0x53e   : > { %v646_v62 = vpack.c.bf16 %v645_v61, %v644_v60 }
 0x540   : > { %945 = vmatmul.mubr.msk.bf16.vlgmr.msra.gmra.mrb[12].mxu0 %vm433_vm5, %v646_v62 }
 0x613   : > { %v697_v1 = vpop.f32.mrb[12].mxu0 }
 0x614   : > { %v698_v2 = vadd.f32 %v880_v0, %v697_v1  ;;  %v946_v3 = vpop.f32.mrb[13].mxu0 }
 0x615   : > { %v700_v4 = vpop.f32.mrb[14].mxu0 }
 0x616   : > { %v701_v5 = vadd.f32 %v880_v0, %v700_v4  ;;  %v947_v6 = vpop.f32.mrb[15].mxu0  ;;  %v704_v7 = vmax.f32 %v698_v2, 0.0 }
 0x618   : > { %v705_v8 = vmax.f32 %v701_v5, 0.0 }
 0x61a   : > { %v706_v9 = vpack.c.bf16 %v705_v8, %v704_v7 }
 0x61c   : > { %716 = vxpose.xlu0.c.b16.start.end [1/1] (short) (narrow) %v706_v9, 16 }
 0x682   : > { %v724_v10 = vpop.trf.xlu0 }
 0x683   : > { %951 = vmatmul.mubr.msk.bf16.vlgmr.msra.gmra.mrb[12].mxu1 %vm379_vm3, %v724_v10 }
 0x756   : > { %v775_v12 = vpop.f32.mrb[12].mxu1 }
 0x757   : > { %v776_v13 = vadd.f32 %v882_v11, %v775_v12  ;;  %v952_v14 = vpop.f32.mrb[13].mxu1 }
 0x758   : > { %v778_v15 = vpop.f32.mrb[14].mxu1 }
 0x759   : > { %781 = vst [vmem:[%s298_s25] sm:$0xff] %v776_v13  ;;  %v953_v16 = vpop.f32.mrb[15].mxu1 }
 0x75a   : > { %1012 = shalt.err (!%p1009_p3)
}
 0x75b   : > { %s1013_s20 = scalar_lea.hbm %s1243_s13, 128  ;;  %s1017_s24 = scalar_lea.hbm %s1293_s8, 512 }
 0x75c   : > { %p1014_p4 = scmp.ne.s32.totalorder %s1243_s13, %s1013_s20  ;;  %p1018_p9 = scmp.lt.u32.totalorder %s1243_s13, %s1293_s8 }
 0x75d   : > { %p1019_p10 = scmp.lt.u32.totalorder %s1017_s24, %s1013_s20  ;;  %p1021_p12 = scmp.lt.u32.totalorder %s1013_s20, %s1243_s13 }
 0x75e   : > { %p1015_p7 = pnand %p1014_p4, %p1149_p5 }
 0x75f   : > { %p1020_p11 = por %p1019_p10, %p1018_p9 }
 0x760   : > { %p1016_p8 = pneg %p1015_p7 }
 0x761   : > { %p1022_p13 = por %p1021_p12, %p1020_p11 }
 0x763   : > { %p1023_p0 = pnand %p1022_p13, %p1016_p8 }
 0x765   : > { %1026 = shalt.err (!%p1023_p0)
}
 0x766   : > { %954 = dma.vmem_to_hbm [thread:$0]  (%p1149_p5), %s1245_s26, 128, %s1243_s13, %s783_s17  }
 0x767 PF: > { %p960_p1 = scmp.ge.s32.totalorder %s1061_s30, 2  ;;  %s808_s12 = sand.u32 1, %s1049_s27  }
 0x768   : > { %s809_s9 = scalar_lea.sflag [#allocation3], %s808_s12 }
 0x769   : > { %p957_p2 = pnand %p960_p1, %p1153_p6 }
 0x76b   : > { %1044 = dma.done.wait (!%p957_p2), %s809_s9, 128  }
 0x76c   : > { %1046 = vsyncadd (!%p957_p2), %s809_s9, 4294967168  ;;  %p18_p3 = scmp.ge.s32.totalorder %s1136_s11, 6   ;;  %s1296_s27 = smov %s1053_s28 }
 0x76d   : > { %s1297_s28 = smov %s1057_s29  ;;  %s1298_s29 = smov %s1147_s14 }
 0x76e   : > { %s1299_s30 = smov %s1136_s11  ;;  %20 = sbr.rel (!%p18_p3) target bundleno = 3 (0x3), region = 93 }
 0x775   :  { %814 = vsyncpa [#allocation3], 1 }
 0x776   :  { %816 = vsyncpa [#allocation3 + $0x1], 1 }

</bundles_post_ra>
